<compile_context>
chip_gen: v7x
topology: tpu7x:2x2x1
jax: 0.10.0
libtpu: 0.0.40
codegen_flags: <defaults>
</compile_context>

<pallas_src>
import jax
import jax.numpy as jnp
from jax.experimental import pallas as pl
from jax.experimental.pallas import tpu as pltpu

# MLP layer sizes from Basic_Net.__init__ (input_dim=38, output_dim=1)
LAYER_DIMS = [38, 8, 16, 32, 64, 32, 16, 1]

_TB_MAX = 4096  # max batch-tile (lanes); (38,4096) f32 tile is ~0.6 MiB


def _mlp_kernel(x_ref, *refs):
    """Whole 7-layer MLP on one feature-major (in_dim, TB) batch tile.

    refs = (w1, b1, w2, b2, ..., w7, b7, out_ref).
    Weights are (out, in) bf16, biases (out, 1) f32.  Each layer is
    h <- relu(W @ h + b) with f32 accumulation on the MXU; the batch (TB)
    stays on the lane dimension throughout.
    """
    out_ref = refs[-1]
    param_refs = refs[:-1]
    n_layers = len(param_refs) // 2

    h = x_ref[...]                                   # (in, TB) f32
    for li in range(n_layers):
        w = param_refs[2 * li][...]                  # (out, in)  bf16
        b = param_refs[2 * li + 1][...]              # (out, 1)   f32
        h = jnp.dot(w, h.astype(w.dtype),
                    preferred_element_type=jnp.float32) + b
        if li != n_layers - 1:                       # ReLU on all but last
            h = jnp.maximum(h, 0.0)
    out_ref[...] = h.astype(out_ref.dtype)           # (out_dim, TB) lane-dense


def _round_up(n, m):
    return ((n + m - 1) // m) * m


def _cdiv(a, b):
    return (a + b - 1) // b


@jax.jit
def basic_net_forward(x, params):
    """x: (B, in_dim) f32; params: list of (W:(out,in) f32, b:(out,) f32)."""
    B, in_dim = x.shape
    out_dim = params[-1][0].shape[0]

    # All weights (incl. the final layer) in bf16: a f32xf32 dot decomposes
    # into a multi-pass bf16 matmul (~3x the MXU pushes), so keeping the last
    # layer in f32 made it the most expensive one.  Biases stay f32 (out, 1)
    # so they broadcast over the lane (batch) dimension.
    flat_params = []
    for w, b in params:
        flat_params.append(w.astype(jnp.bfloat16))                 # (out, in)
        flat_params.append(b.reshape(-1, 1).astype(jnp.float32))   # (out, 1)

    # Batch tiling: pad only to a multiple of 128 lanes, then split evenly
    # into tiles of at most _TB_MAX.  Guarantee >=2 grid steps when the
    # padded batch allows it so v7x's two TensorCores both get work.
    B128 = _round_up(B, 128)
    n_tiles = max(1, _cdiv(B128, _TB_MAX))
    if n_tiles == 1 and B128 >= 256:
        n_tiles = 2
    TB = _round_up(_cdiv(B128, n_tiles), 128)
    B_pad = n_tiles * TB

    # Feature-major input: (in_dim, B_pad).  Padded columns compute garbage
    # (bias propagates through ReLU) but are sliced off at the end.
    xt = x.T
    if B_pad != B:
        xt = jnp.pad(xt, ((0, 0), (0, B_pad - B)))

    grid = (n_tiles,)

    # x / out tiles follow the grid index on the lane (batch) axis; every
    # weight/bias uses a constant index_map -> DMA'd once, stays resident.
    in_specs = [pl.BlockSpec((in_dim, TB), lambda i: (0, i))]
    for p in flat_params:
        in_specs.append(pl.BlockSpec(p.shape, lambda i: (0, 0)))

    out_t = pl.pallas_call(
        _mlp_kernel,
        out_shape=jax.ShapeDtypeStruct((out_dim, B_pad), jnp.float32),
        grid=grid,
        in_specs=in_specs,
        out_specs=pl.BlockSpec((out_dim, TB), lambda i: (0, i)),
        compiler_params=pltpu.CompilerParams(
            dimension_semantics=("parallel",)),   # megacore sharding on v7x
    )(xt, *flat_params)

    return out_t[:, :B].T                         # back to (B, out_dim)


def init_params(key, dims):
    """Deterministic PyTorch-style init: U(-1/sqrt(fan_in), 1/sqrt(fan_in)).

    Weights stored PyTorch-style as (out_features, in_features), biases (out,).
    """
    params = []
    for i in range(len(dims) - 1):
        fan_in, fan_out = dims[i], dims[i + 1]
        key, kw, kb = jax.random.split(key, 3)
        bound = 1.0 / jnp.sqrt(jnp.float32(fan_in))
        w = jax.random.uniform(kw, (fan_out, fan_in), jnp.float32, -bound, bound)
        b = jax.random.uniform(kb, (fan_out,), jnp.float32, -bound, bound)
        params.append((w, b))
    return params


def reference_forward(x, params):
    """Pure f32 reference matching PyTorch Basic_Net.forward."""
    h = x
    for i, (w, b) in enumerate(params):
        h = h @ w.T + b
        if i != len(params) - 1:
            h = jnp.maximum(h, 0.0)
    return h


if __name__ == "__main__":
    key = jax.random.PRNGKey(0)
    key, kx = jax.random.split(key)

    batch = 64
    x = jax.random.normal(kx, (batch, LAYER_DIMS[0]), jnp.float32)
    params = init_params(key, LAYER_DIMS)

    out = jax.block_until_ready(basic_net_forward(x, params))
    ref = reference_forward(x, params)

    assert out.shape == (batch, 1), out.shape
    # All weights in bf16 (f32 accumulation) -> relaxed tolerance vs the pure
    # f32 reference (abs + rel combined).
    scale = float(jnp.maximum(1.0, jnp.max(jnp.abs(ref))))
    max_err = float(jnp.max(jnp.abs(out - ref)))
    assert max_err < 3e-2 * scale, f"max err {max_err} (scale {scale})"
    print("KERNEL_OK")
</pallas_src>

<mosaic_0001>
module attributes {stable_mosaic.version = 11 : i64} {
  func.func @_mlp_kernel(%arg0: i32, %arg1: memref<38x128xf32, #tpu.memory_space<vmem>>, %arg2: memref<8x38xbf16, #tpu.memory_space<vmem>>, %arg3: memref<8x1xf32, #tpu.memory_space<vmem>>, %arg4: memref<16x8xbf16, #tpu.memory_space<vmem>>, %arg5: memref<16x1xf32, #tpu.memory_space<vmem>>, %arg6: memref<32x16xbf16, #tpu.memory_space<vmem>>, %arg7: memref<32x1xf32, #tpu.memory_space<vmem>>, %arg8: memref<64x32xbf16, #tpu.memory_space<vmem>>, %arg9: memref<64x1xf32, #tpu.memory_space<vmem>>, %arg10: memref<32x64xbf16, #tpu.memory_space<vmem>>, %arg11: memref<32x1xf32, #tpu.memory_space<vmem>>, %arg12: memref<16x32xbf16, #tpu.memory_space<vmem>>, %arg13: memref<16x1xf32, #tpu.memory_space<vmem>>, %arg14: memref<1x16xbf16, #tpu.memory_space<vmem>>, %arg15: memref<1x1xf32, #tpu.memory_space<vmem>>, %arg16: memref<1x128xf32, #tpu.memory_space<vmem>>) attributes {dimension_semantics = [#tpu.dimension_semantics<parallel>], iteration_bounds = array<i64: 1>, scalar_prefetch = 0 : i64, scratch_operands = 0 : i64, tpu.core_type = #tpu.core_type<tc>, window_params = [{transform_indices = @transform_0, window_bounds = array<i64: 38, 128>}, {pipeline_mode = #tpu.pipeline_mode<synchronous>, transform_indices = @transform_1, window_bounds = array<i64: 8, 38>}, {pipeline_mode = #tpu.pipeline_mode<synchronous>, transform_indices = @transform_2, window_bounds = array<i64: 8, 1>}, {pipeline_mode = #tpu.pipeline_mode<synchronous>, transform_indices = @transform_3, window_bounds = array<i64: 16, 8>}, {pipeline_mode = #tpu.pipeline_mode<synchronous>, transform_indices = @transform_4, window_bounds = array<i64: 16, 1>}, {pipeline_mode = #tpu.pipeline_mode<synchronous>, transform_indices = @transform_5, window_bounds = array<i64: 32, 16>}, {pipeline_mode = #tpu.pipeline_mode<synchronous>, transform_indices = @transform_6, window_bounds = array<i64: 32, 1>}, {pipeline_mode = #tpu.pipeline_mode<synchronous>, transform_indices = @transform_7, window_bounds = array<i64: 64, 32>}, {pipeline_mode = #tpu.pipeline_mode<synchronous>, transform_indices = @transform_8, window_bounds = array<i64: 64, 1>}, {pipeline_mode = #tpu.pipeline_mode<synchronous>, transform_indices = @transform_9, window_bounds = array<i64: 32, 64>}, {pipeline_mode = #tpu.pipeline_mode<synchronous>, transform_indices = @transform_10, window_bounds = array<i64: 32, 1>}, {pipeline_mode = #tpu.pipeline_mode<synchronous>, transform_indices = @transform_11, window_bounds = array<i64: 16, 32>}, {pipeline_mode = #tpu.pipeline_mode<synchronous>, transform_indices = @transform_12, window_bounds = array<i64: 16, 1>}, {pipeline_mode = #tpu.pipeline_mode<synchronous>, transform_indices = @transform_13, window_bounds = array<i64: 1, 16>}, {pipeline_mode = #tpu.pipeline_mode<synchronous>, transform_indices = @transform_14, window_bounds = array<i64: 1, 1>}, {transform_indices = @transform_15, window_bounds = array<i64: 1, 128>}]} {
    %c0 = arith.constant 0 : index
    %c0_0 = arith.constant 0 : index
    %0 = vector.load %arg1[%c0, %c0_0] : memref<38x128xf32, #tpu.memory_space<vmem>>, vector<38x128xf32>
    %c0_1 = arith.constant 0 : index
    %c0_2 = arith.constant 0 : index
    %1 = vector.load %arg2[%c0_1, %c0_2] : memref<8x38xbf16, #tpu.memory_space<vmem>>, vector<8x38xbf16>
    %c0_3 = arith.constant 0 : index
    %c0_4 = arith.constant 0 : index
    %2 = vector.load %arg3[%c0_3, %c0_4] : memref<8x1xf32, #tpu.memory_space<vmem>>, vector<8x1xf32>
    %3 = arith.truncf %0 : vector<38x128xf32> to vector<38x128xbf16>
    %cst = arith.constant dense<0.000000e+00> : vector<8x128xf32>
    %4 = tpu.matmul %1, %3, %cst {dimension_numbers = #tpu.dot_dimension_numbers<[1], [0], [0], [1], [0, 0, 1, 1], [], []>} : vector<8x38xbf16>, vector<38x128xbf16>, vector<8x128xf32> -> vector<8x128xf32>
    %5 = vector.broadcast %2 : vector<8x1xf32> to vector<8x128xf32>
    %6 = arith.addf %4, %5 : vector<8x128xf32>
    %cst_5 = arith.constant 0.000000e+00 : f32
    %7 = vector.broadcast %cst_5 : f32 to vector<8x128xf32>
    %8 = arith.maximumf %6, %7 : vector<8x128xf32>
    %c0_6 = arith.constant 0 : index
    %c0_7 = arith.constant 0 : index
    %9 = vector.load %arg4[%c0_6, %c0_7] : memref<16x8xbf16, #tpu.memory_space<vmem>>, vector<16x8xbf16>
    %c0_8 = arith.constant 0 : index
    %c0_9 = arith.constant 0 : index
    %10 = vector.load %arg5[%c0_8, %c0_9] : memref<16x1xf32, #tpu.memory_space<vmem>>, vector<16x1xf32>
    %11 = arith.truncf %8 : vector<8x128xf32> to vector<8x128xbf16>
    %cst_10 = arith.constant dense<0.000000e+00> : vector<16x128xf32>
    %12 = tpu.matmul %9, %11, %cst_10 {dimension_numbers = #tpu.dot_dimension_numbers<[1], [0], [0], [1], [0, 0, 1, 1], [], []>} : vector<16x8xbf16>, vector<8x128xbf16>, vector<16x128xf32> -> vector<16x128xf32>
    %13 = vector.broadcast %10 : vector<16x1xf32> to vector<16x128xf32>
    %14 = arith.addf %12, %13 : vector<16x128xf32>
    %cst_11 = arith.constant 0.000000e+00 : f32
    %15 = vector.broadcast %cst_11 : f32 to vector<16x128xf32>
    %16 = arith.maximumf %14, %15 : vector<16x128xf32>
    %c0_12 = arith.constant 0 : index
    %c0_13 = arith.constant 0 : index
    %17 = vector.load %arg6[%c0_12, %c0_13] : memref<32x16xbf16, #tpu.memory_space<vmem>>, vector<32x16xbf16>
    %c0_14 = arith.constant 0 : index
    %c0_15 = arith.constant 0 : index
    %18 = vector.load %arg7[%c0_14, %c0_15] : memref<32x1xf32, #tpu.memory_space<vmem>>, vector<32x1xf32>
    %19 = arith.truncf %16 : vector<16x128xf32> to vector<16x128xbf16>
    %cst_16 = arith.constant dense<0.000000e+00> : vector<32x128xf32>
    %20 = tpu.matmul %17, %19, %cst_16 {dimension_numbers = #tpu.dot_dimension_numbers<[1], [0], [0], [1], [0, 0, 1, 1], [], []>} : vector<32x16xbf16>, vector<16x128xbf16>, vector<32x128xf32> -> vector<32x128xf32>
    %21 = vector.broadcast %18 : vector<32x1xf32> to vector<32x128xf32>
    %22 = arith.addf %20, %21 : vector<32x128xf32>
    %cst_17 = arith.constant 0.000000e+00 : f32
    %23 = vector.broadcast %cst_17 : f32 to vector<32x128xf32>
    %24 = arith.maximumf %22, %23 : vector<32x128xf32>
    %c0_18 = arith.constant 0 : index
    %c0_19 = arith.constant 0 : index
    %25 = vector.load %arg8[%c0_18, %c0_19] : memref<64x32xbf16, #tpu.memory_space<vmem>>, vector<64x32xbf16>
    %c0_20 = arith.constant 0 : index
    %c0_21 = arith.constant 0 : index
    %26 = vector.load %arg9[%c0_20, %c0_21] : memref<64x1xf32, #tpu.memory_space<vmem>>, vector<64x1xf32>
    %27 = arith.truncf %24 : vector<32x128xf32> to vector<32x128xbf16>
    %cst_22 = arith.constant dense<0.000000e+00> : vector<64x128xf32>
    %28 = tpu.matmul %25, %27, %cst_22 {dimension_numbers = #tpu.dot_dimension_numbers<[1], [0], [0], [1], [0, 0, 1, 1], [], []>} : vector<64x32xbf16>, vector<32x128xbf16>, vector<64x128xf32> -> vector<64x128xf32>
    %29 = vector.broadcast %26 : vector<64x1xf32> to vector<64x128xf32>
    %30 = arith.addf %28, %29 : vector<64x128xf32>
    %cst_23 = arith.constant 0.000000e+00 : f32
    %31 = vector.broadcast %cst_23 : f32 to vector<64x128xf32>
    %32 = arith.maximumf %30, %31 : vector<64x128xf32>
    %c0_24 = arith.constant 0 : index
    %c0_25 = arith.constant 0 : index
    %33 = vector.load %arg10[%c0_24, %c0_25] : memref<32x64xbf16, #tpu.memory_space<vmem>>, vector<32x64xbf16>
    %c0_26 = arith.constant 0 : index
    %c0_27 = arith.constant 0 : index
    %34 = vector.load %arg11[%c0_26, %c0_27] : memref<32x1xf32, #tpu.memory_space<vmem>>, vector<32x1xf32>
    %35 = arith.truncf %32 : vector<64x128xf32> to vector<64x128xbf16>
    %cst_28 = arith.constant dense<0.000000e+00> : vector<32x128xf32>
    %36 = tpu.matmul %33, %35, %cst_28 {dimension_numbers = #tpu.dot_dimension_numbers<[1], [0], [0], [1], [0, 0, 1, 1], [], []>} : vector<32x64xbf16>, vector<64x128xbf16>, vector<32x128xf32> -> vector<32x128xf32>
    %37 = vector.broadcast %34 : vector<32x1xf32> to vector<32x128xf32>
    %38 = arith.addf %36, %37 : vector<32x128xf32>
    %cst_29 = arith.constant 0.000000e+00 : f32
    %39 = vector.broadcast %cst_29 : f32 to vector<32x128xf32>
    %40 = arith.maximumf %38, %39 : vector<32x128xf32>
    %c0_30 = arith.constant 0 : index
    %c0_31 = arith.constant 0 : index
    %41 = vector.load %arg12[%c0_30, %c0_31] : memref<16x32xbf16, #tpu.memory_space<vmem>>, vector<16x32xbf16>
    %c0_32 = arith.constant 0 : index
    %c0_33 = arith.constant 0 : index
    %42 = vector.load %arg13[%c0_32, %c0_33] : memref<16x1xf32, #tpu.memory_space<vmem>>, vector<16x1xf32>
    %43 = arith.truncf %40 : vector<32x128xf32> to vector<32x128xbf16>
    %cst_34 = arith.constant dense<0.000000e+00> : vector<16x128xf32>
    %44 = tpu.matmul %41, %43, %cst_34 {dimension_numbers = #tpu.dot_dimension_numbers<[1], [0], [0], [1], [0, 0, 1, 1], [], []>} : vector<16x32xbf16>, vector<32x128xbf16>, vector<16x128xf32> -> vector<16x128xf32>
    %45 = vector.broadcast %42 : vector<16x1xf32> to vector<16x128xf32>
    %46 = arith.addf %44, %45 : vector<16x128xf32>
    %cst_35 = arith.constant 0.000000e+00 : f32
    %47 = vector.broadcast %cst_35 : f32 to vector<16x128xf32>
    %48 = arith.maximumf %46, %47 : vector<16x128xf32>
    %c0_36 = arith.constant 0 : index
    %c0_37 = arith.constant 0 : index
    %49 = vector.load %arg14[%c0_36, %c0_37] : memref<1x16xbf16, #tpu.memory_space<vmem>>, vector<1x16xbf16>
    %c0_38 = arith.constant 0 : index
    %c0_39 = arith.constant 0 : index
    %50 = vector.load %arg15[%c0_38, %c0_39] : memref<1x1xf32, #tpu.memory_space<vmem>>, vector<1x1xf32>
    %51 = arith.truncf %48 : vector<16x128xf32> to vector<16x128xbf16>
    %cst_40 = arith.constant dense<0.000000e+00> : vector<1x128xf32>
    %52 = tpu.matmul %49, %51, %cst_40 {dimension_numbers = #tpu.dot_dimension_numbers<[1], [0], [0], [1], [0, 0, 1, 1], [], []>} : vector<1x16xbf16>, vector<16x128xbf16>, vector<1x128xf32> -> vector<1x128xf32>
    %53 = vector.broadcast %50 : vector<1x1xf32> to vector<1x128xf32>
    %54 = arith.addf %52, %53 : vector<1x128xf32>
    %c0_41 = arith.constant 0 : index
    %c0_42 = arith.constant 0 : index
    %55 = vector.load %arg16[%c0_41, %c0_42] : memref<1x128xf32, #tpu.memory_space<vmem>>, vector<1x128xf32>
    tpu.vector_store %arg16[%c0_41, %c0_42], %54 {strides = array<i32>} : memref<1x128xf32, #tpu.memory_space<vmem>>, vector<1x128xf32>,
    return
  }
  func.func @transform_0(%arg0: i32) -> (i32, i32) {
    %c0_i32 = arith.constant 0 : i32
    %c0_i32_0 = arith.constant 0 : i32
    return %c0_i32, %arg0 : i32, i32
  }
  func.func @transform_1(%arg0: i32) -> (i32, i32) {
    %c0_i32 = arith.constant 0 : i32
    %c0_i32_0 = arith.constant 0 : i32
    %c0_i32_1 = arith.constant 0 : i32
    return %c0_i32, %c0_i32_0 : i32, i32
  }
  func.func @transform_2(%arg0: i32) -> (i32, i32) {
    %c0_i32 = arith.constant 0 : i32
    %c0_i32_0 = arith.constant 0 : i32
    %c0_i32_1 = arith.constant 0 : i32
    return %c0_i32, %c0_i32_0 : i32, i32
  }
  func.func @transform_3(%arg0: i32) -> (i32, i32) {
    %c0_i32 = arith.constant 0 : i32
    %c0_i32_0 = arith.constant 0 : i32
    %c0_i32_1 = arith.constant 0 : i32
    return %c0_i32, %c0_i32_0 : i32, i32
  }
  func.func @transform_4(%arg0: i32) -> (i32, i32) {
    %c0_i32 = arith.constant 0 : i32
    %c0_i32_0 = arith.constant 0 : i32
    %c0_i32_1 = arith.constant 0 : i32
    return %c0_i32, %c0_i32_0 : i32, i32
  }
  func.func @transform_5(%arg0: i32) -> (i32, i32) {
    %c0_i32 = arith.constant 0 : i32
    %c0_i32_0 = arith.constant 0 : i32
    %c0_i32_1 = arith.constant 0 : i32
    return %c0_i32, %c0_i32_0 : i32, i32
  }
  func.func @transform_6(%arg0: i32) -> (i32, i32) {
    %c0_i32 = arith.constant 0 : i32
    %c0_i32_0 = arith.constant 0 : i32
    %c0_i32_1 = arith.constant 0 : i32
    return %c0_i32, %c0_i32_0 : i32, i32
  }
  func.func @transform_7(%arg0: i32) -> (i32, i32) {
    %c0_i32 = arith.constant 0 : i32
    %c0_i32_0 = arith.constant 0 : i32
    %c0_i32_1 = arith.constant 0 : i32
    return %c0_i32, %c0_i32_0 : i32, i32
  }
  func.func @transform_8(%arg0: i32) -> (i32, i32) {
    %c0_i32 = arith.constant 0 : i32
    %c0_i32_0 = arith.constant 0 : i32
    %c0_i32_1 = arith.constant 0 : i32
    return %c0_i32, %c0_i32_0 : i32, i32
  }
  func.func @transform_9(%arg0: i32) -> (i32, i32) {
    %c0_i32 = arith.constant 0 : i32
    %c0_i32_0 = arith.constant 0 : i32
    %c0_i32_1 = arith.constant 0 : i32
    return %c0_i32, %c0_i32_0 : i32, i32
  }
  func.func @transform_10(%arg0: i32) -> (i32, i32) {
    %c0_i32 = arith.constant 0 : i32
    %c0_i32_0 = arith.constant 0 : i32
    %c0_i32_1 = arith.constant 0 : i32
    return %c0_i32, %c0_i32_0 : i32, i32
  }
  func.func @transform_11(%arg0: i32) -> (i32, i32) {
    %c0_i32 = arith.constant 0 : i32
    %c0_i32_0 = arith.constant 0 : i32
    %c0_i32_1 = arith.constant 0 : i32
    return %c0_i32, %c0_i32_0 : i32, i32
  }
  func.func @transform_12(%arg0: i32) -> (i32, i32) {
    %c0_i32 = arith.constant 0 : i32
    %c0_i32_0 = arith.constant 0 : i32
    %c0_i32_1 = arith.constant 0 : i32
    return %c0_i32, %c0_i32_0 : i32, i32
  }
  func.func @transform_13(%arg0: i32) -> (i32, i32) {
    %c0_i32 = arith.constant 0 : i32
    %c0_i32_0 = arith.constant 0 : i32
    %c0_i32_1 = arith.constant 0 : i32
    return %c0_i32, %c0_i32_0 : i32, i32
  }
  func.func @transform_14(%arg0: i32) -> (i32, i32) {
    %c0_i32 = arith.constant 0 : i32
    %c0_i32_0 = arith.constant 0 : i32
    %c0_i32_1 = arith.constant 0 : i32
    return %c0_i32, %c0_i32_0 : i32, i32
  }
  func.func @transform_15(%arg0: i32) -> (i32, i32) {
    %c0_i32 = arith.constant 0 : i32
    %c0_i32_0 = arith.constant 0 : i32
    return %c0_i32, %arg0 : i32, i32
  }
}

</mosaic_0001>

<bundles_post_ra>
// kernel: basic_net_forward.1
= control target key start
LH: loop header
LB: loop body
LE: loop exit
PB: predicated region body
PF: predicated region fallthrough
CT: control target
= control target key end

     0   :  { %v803_v0 = vmov 0.0   ;;  %vm804_vm0 = vmmov 0   ;;  %v805_v7 = vmov 0   ;;  %vm72_vm1 = vcmask 1042432   ;;  %s1031_s0 = inlined_call_operand.vmem [shape: f32[38,128], index: 0, kind: input, shape index: {}]   ;;  %s1032_s2 = inlined_call_operand.vmem [shape: f32[8,1], index: 2, kind: input, shape index: {}]   ;;  %s1033_s4 = inlined_call_operand.vmem [shape: f32[16,1], index: 4, kind: input, shape index: {}]   ;;  %s1034_s6 = inlined_call_operand.vmem [shape: f32[32,1], index: 6, kind: input, shape index: {}]   ;;  %s1035_s1 = inlined_call_operand.vmem [shape: bf16[8,38], index: 1, kind: input, shape index: {}]   ;;  %s1036_s8 = inlined_call_operand.vmem [shape: f32[64,1], index: 8, kind: input, shape index: {}]   ;;  %s1037_s10 = inlined_call_operand.vmem [shape: f32[32,1], index: 10, kind: input, shape index: {}]   ;;  %s1038_s12 = inlined_call_operand.vmem [shape: f32[16,1], index: 12, kind: input, shape index: {}]   ;;  %s1039_s3 = inlined_call_operand.vmem [shape: bf16[16,8], index: 3, kind: input, shape index: {}]   ;;  %s1040_s14 = inlined_call_operand.<no memory space> [shape: f32[1,1], index: 14, kind: input, shape index: {}]   ;;  %s1041_s5 = inlined_call_operand.vmem [shape: bf16[32,16], index: 5, kind: input, shape index: {}]   ;;  %s1042_s7 = inlined_call_operand.vmem [shape: bf16[64,32], index: 7, kind: input, shape index: {}]   ;;  %s1043_s9 = inlined_call_operand.vmem [shape: bf16[32,64], index: 9, kind: input, shape index: {}]   ;;  %s1044_s11 = inlined_call_operand.vmem [shape: bf16[16,32], index: 11, kind: input, shape index: {}]   ;;  %s1045_s13 = inlined_call_operand.vmem [shape: bf16[1,16], index: 13, kind: input, shape index: {}]   ;;  %s1046_s15 = inlined_call_operand.vmem [shape: f32[1,128], index: 15, kind: output, shape index: {}]  }
   0x1   :  { %728 = vmatprep.subr.bf16.mxu0 %v803_v0  ;;  %v53_v1 = vld [vmem:[%s1031_s0] sm:$0xff]  ;;  %v54_v2 = vld [vmem:[%s1031_s0 + $0x8] sm:$0xff]  ;;  %v55_v3 = vld [vmem:[%s1031_s0 + $0x10] sm:$0xff]  ;;  %734 = vmatprep.mubr.msk.bf16.mxu0 %vm804_vm0, %v803_v0  ;;  %vm68_vm2 = vcmask 310272   ;;  %v20_v24 = vstv %s1040_s14  ;;  %vm141_vm3 = vcmask 1043456   ;;  %vm137_vm4 = vcmask 64512  }
   0x2   :  { %v60_v4 = vpack.c.bf16 %v54_v2, %v53_v1  ;;  %v56_v5 = vld [vmem:[%s1031_s0 + $0x18] sm:$0xff]  ;;  %v57_v6 = vld [vmem:[%s1031_s0 + $0x20] sm:$0x3f]  ;;  %791 = vset.pattern.permute.xlu0 %v805_v7  ;;  %738 = vmatprep.subr.bf16.mxu1 %v803_v0  ;;  %v193_v13 = vld [vmem:[%s1034_s6 + $0x8] sm:$0xff]  ;;  %21 = vst [vmem:[#allocation2] sm:$0x1] %v20_v24 }
   0x3   :  { %v59_v8 = vld [vmem:[%s1032_s2] sm:$0xff]  ;;  %740 = vmatprep.mubr.msk.bf16.mxu1 %vm804_vm0, %v803_v0  ;;  %792 = vset.pattern.permute.xlu1 %v805_v7  ;;  %v61_v9 = vpack.c.bf16 %v56_v5, %v55_v3  ;;  %v62_v10 = vpack.c.bf16 %v57_v6, %v57_v6  ;;  %v195_v15 = vld [vmem:[%s1034_s6 + $0x18] sm:$0xff]  ;;  %v296_v16 = vld [vmem:[%s1036_s8 + $0x8] sm:$0xff]  ;;  %vm227_vm5 = vcmask 130048   ;;  %vm365_vm6 = vcmask 261120  }
   0x4   :  { %729 = vmatpush3.bf16.msra.mxu0 %v60_v4  ;;  %65 = vperm.xlu0 %791, %v59_v8   ;;  %v119_v11 = vld [vmem:[%s1033_s4] sm:$0xff]  ;;  %v298_v17 = vld [vmem:[%s1036_s8 + $0x18] sm:$0xff]  ;;  %v300_v18 = vld [vmem:[%s1036_s8 + $0x28] sm:$0xff]  ;;  %vm493_vm7 = vcmask 523264  }
   0x5   :  { %730 = vmatprep.subr.bf16.mxu0 %v803_v0  ;;  %v74_v12 = vsel %vm72_vm1, %v62_v10, 0  ;;  %v58_v14 = vld [vmem:[%s1035_s1] sm:$0xf]  ;;  %v302_v19 = vld [vmem:[%s1036_s8 + $0x38] sm:$0xff]  ;;  %v456_v20 = vld [vmem:[%s1037_s10 + $0x8] sm:$0xff] }
   0x6   :  { %v458_v21 = vld [vmem:[%s1037_s10 + $0x18] sm:$0xff]  ;;  %v556_v22 = vld [vmem:[%s1038_s12 + $0x8] sm:$0xff]  ;;  %v192_v25 = vld [vmem:[%s1034_s6] sm:$0xff] }
   0x7   :  { %v120_v23 = vld [vmem:[%s1033_s4 + $0x8] sm:$0xff]  ;;  %v194_v26 = vld [vmem:[%s1034_s6 + $0x10] sm:$0xff]  ;;  %v295_v27 = vld [vmem:[%s1036_s8] sm:$0xff] }
   0x8   :  { %731 = vmatpush3.bf16.msra.mxu0 %v61_v9  ;;  %124 = vperm.xlu0 %791, %v119_v11   ;;  %v297_v28 = vld [vmem:[%s1036_s8 + $0x10] sm:$0xff]  ;;  %v299_v29 = vld [vmem:[%s1036_s8 + $0x20] sm:$0xff]  ;;  %v795_v57 = vld [vmem:[%s1041_s5 + $0x8] sm:$0xff]  }
   0x9   :  { %732 = vmatprep.subr.bf16.mxu0 %v803_v0  ;;  %129 = vperm.xlu1 %792, %v120_v23   ;;  %v301_v30 = vld [vmem:[%s1036_s8 + $0x30] sm:$0xff]  ;;  %v455_v31 = vld [vmem:[%s1037_s10] sm:$0xff] }
   0xa   :  { %v457_v32 = vld [vmem:[%s1037_s10 + $0x10] sm:$0xff]  ;;  %v555_v33 = vld [vmem:[%s1038_s12] sm:$0xff] }
   0xb   :  { %v621_v34 = vld [vmem:[#allocation2] sm:$0x1] }
   0xc   :  { %733 = vmatpush3.bf16.msra.mxu0 %v74_v12  ;;  %204 = vperm.xlu0 %791, %v193_v13   ;;  %v793_v44 = vld [vmem:[%s1039_s3] sm:$0xff]  }
   0xd   :  { %199 = vperm.xlu1 %792, %v192_v25   ;;  %v794_v45 = vld [vmem:[%s1041_s5] sm:$0xff]  }
   0xe   :  { %v796_v58 = vld [vmem:[%s1042_s7] sm:$0xff]  }
   0xf   :  { %735 = vmatmul.mubr.msk.bf16.vlgmr.msra.gmra.mrb[0].mxu0 %vm68_vm2, %v58_v14  ;;  %v797_v14 = vld [vmem:[%s1042_s7 + $0x8] sm:$0xff]  }
  0x10   :  { %214 = vperm.xlu0 %791, %v195_v15   ;;  %754 = vmatprep.mubr.msk.bf16.mxu0 %vm365_vm6, %v796_v58  ;;  %v798_v15 = vld [vmem:[%s1042_s7 + $0x10] sm:$0xff]  }
  0x11   :  { %209 = vperm.xlu1 %792, %v194_v26  }
  0x14   :  { %312 = vperm.xlu0 %791, %v296_v16   ;;  %v799_v16 = vld [vmem:[%s1042_s7 + $0x18] sm:$0xff]  }
  0x15   :  { %307 = vperm.xlu1 %792, %v295_v27  }
  0x18   :  { %322 = vperm.xlu0 %791, %v298_v17   ;;  %v800_v17 = vld [vmem:[%s1043_s9] sm:$0xff]  }
  0x19   :  { %317 = vperm.xlu1 %792, %v297_v28  }
  0x1c   :  { %332 = vperm.xlu0 %791, %v300_v18  }
  0x1d   :  { %327 = vperm.xlu1 %792, %v299_v29  }
  0x20   :  { %342 = vperm.xlu0 %791, %v302_v19  }
  0x21   :  { %337 = vperm.xlu1 %792, %v301_v30  }
  0x24   :  { %470 = vperm.xlu0 %791, %v456_v20  }
  0x25   :  { %465 = vperm.xlu1 %792, %v455_v31  }
  0x28   :  { %480 = vperm.xlu0 %791, %v458_v21  }
  0x29   :  { %475 = vperm.xlu1 %792, %v457_v32  }
  0x2c   :  { %566 = vperm.xlu0 %791, %v556_v22  }
  0x2d   :  { %561 = vperm.xlu1 %792, %v555_v33  }
  0x31   :  { %625 = vperm.xlu1 %792, %v621_v34  }
  0x83   :  { %v66_v35 = vpop.permute.xlu0 %65 }
  0x87   :  { %v125_v46 = vpop.permute.xlu0 %124 }
  0x88   :  { %v130_v50 = vpop.permute.xlu1 %129 }
  0x8b   :  { %v205_v60 = vpop.permute.xlu0 %204 }
  0x8c   :  { %v200_v59 = vpop.permute.xlu1 %199 }
  0x8f   :  { %v215_v2 = vpop.permute.xlu0 %214 }
  0x90   :  { %v210_v61 = vpop.permute.xlu1 %209 }
  0x93   :  { %v313_v19 = vpop.permute.xlu0 %312 }
  0x94   :  { %v308_v18 = vpop.permute.xlu1 %307 }
  0x97   :  { %v323_v21 = vpop.permute.xlu0 %322 }
  0x98   :  { %v318_v20 = vpop.permute.xlu1 %317 }
  0x9b   :  { %v333_v30 = vpop.permute.xlu0 %332 }
  0x9c   :  { %v328_v25 = vpop.permute.xlu1 %327 }
  0xe2   :  { %v110_v36 = vpop.f32.mrb[0].mxu0 }
  0xe3   :  { %v111_v37 = vadd.f32 %v110_v36, %v66_v35  ;;  %v736_v38 = vpop.f32.mrb[1].mxu0 }
  0xe4   :  { %v113_v39 = vpop.f32.mrb[2].mxu0 }
  0xe5   :  { %v116_v40 = vmax.f32 %v111_v37, 0.0  ;;  %v737_v41 = vpop.f32.mrb[3].mxu0  ;;  %v338_v37 = vpop.permute.xlu1 %337 }
  0xe7   :  { %v121_v42 = vpack.c.bf16 %v116_v40, %v116_v40 }
  0xe9   :  { %v143_v43 = vsel %vm141_vm3, %v121_v42, 0  ;;  %v343_v42 = vpop.permute.xlu0 %342 }
  0xea   :  { %739 = vmatpush3.bf16.msra.mxu1 %v143_v43 }
  0xed   :  { %741 = vmatmul.mubr.msk.bf16.vlgmr.msra.gmra.mrb[0].mxu1 %vm137_vm4, %v793_v44 }
  0xee   :  { %746 = vmatprep.mubr.msk.bf16.mxu1 %vm227_vm5, %v794_v45 }
 0x1c0   :  { %v179_v47 = vpop.f32.mrb[0].mxu1 }
 0x1c1   :  { %v180_v48 = vadd.f32 %v179_v47, %v125_v46  ;;  %v742_v49 = vpop.f32.mrb[1].mxu1 }
 0x1c2   :  { %v182_v51 = vpop.f32.mrb[2].mxu1 }
 0x1c3   :  { %v183_v52 = vadd.f32 %v182_v51, %v130_v50  ;;  %v743_v53 = vpop.f32.mrb[3].mxu1  ;;  %v186_v54 = vmax.f32 %v180_v48, 0.0 }
 0x1c5   :  { %v187_v55 = vmax.f32 %v183_v52, 0.0 }
 0x1c7   :  { %v196_v56 = vpack.c.bf16 %v187_v55, %v186_v54  ;;  %v801_v54 = vld [vmem:[%s1043_s9 + $0x8] sm:$0xff]   ;;  %v466_v55 = vpop.permute.xlu1 %465 }
 0x1c9   :  { %744 = vmatprep.subr.bf16.mxu1 %v196_v56 }
 0x1ca   :  { %745 = vmatpush3.bf16.msra.mxu1 %v196_v56  ;;  %v471_v56 = vpop.permute.xlu0 %470 }
 0x1cd   :  { %747 = vmatmul.mubr.msk.bf16.vlgmr.msra.gmra.mrb[4].mxu1 %vm227_vm5, %v795_v57  ;;  %v476_v57 = vpop.permute.xlu1 %475 }
 0x1ce   :  { %770 = vmatprep.mubr.msk.bf16.mxu1 %vm493_vm7, %v800_v17 }
 0x2a0   :  { %v748_v62 = vpop.f32.mrb[4].mxu1 }
 0x2a1   :  { %v277_v63 = vadd.f32 %v748_v62, %v210_v61  ;;  %v268_v1 = vpop.f32.mrb[5].mxu1  ;;  %v481_v61 = vpop.permute.xlu0 %480 }
 0x2a2   :  { %v269_v3 = vadd.f32 %v268_v1, %v200_v59  ;;  %v749_v4 = vpop.f32.mrb[6].mxu1 }
 0x2a3   :  { %v280_v5 = vadd.f32 %v749_v4, %v215_v2  ;;  %v271_v6 = vpop.f32.mrb[7].mxu1  ;;  %v285_v8 = vmax.f32 %v277_v63, 0.0 }
 0x2a4   :  { %v272_v7 = vadd.f32 %v271_v6, %v205_v60  ;;  %v283_v10 = vmax.f32 %v269_v3, 0.0 }
 0x2a5   :  { %v286_v9 = vmax.f32 %v280_v5, 0.0 }
 0x2a6   :  { %v284_v11 = vmax.f32 %v272_v7, 0.0 }
 0x2a7   :  { %v304_v12 = vpack.c.bf16 %v286_v9, %v285_v8 }
 0x2a8   :  { %v303_v13 = vpack.c.bf16 %v284_v11, %v283_v10  ;;  %v802_v10 = vld [vmem:[%s1044_s11] sm:$0xff]   ;;  %v562_v11 = vpop.permute.xlu1 %561 }
 0x2aa   :  { %750 = vmatprep.subr.bf16.mxu0 %v303_v13 }
 0x2ab   :  { %751 = vmatpush3.bf16.msra.mxu0 %v303_v13 }
 0x2ac   :  { %752 = vmatprep.subr.bf16.mxu0 %v304_v12 }
 0x2af   :  { %753 = vmatpush3.bf16.msra.mxu0 %v304_v12 }
 0x2b0   :  { %774 = vmatprep.subr.bf16.mxu0 %v803_v0 }
 0x2b2   :  { %755 = vmatmul.mubr.msk.bf16.vlgmr.msra.gmra.mrb[4].mxu0 %vm365_vm6, %v797_v14 }
 0x2b3   :  { %758 = vmatprep.mubr.msk.bf16.mxu0 %vm365_vm6, %v798_v15  ;;  %v567_v15 = vpop.permute.xlu0 %566 }
 0x2ba   :  { %759 = vmatmul.mubr.msk.bf16.gmra.mrb[8].mxu0 %vm365_vm6, %v799_v16 }
 0x2bb   :  { %778 = vmatprep.mubr.msk.bf16.mxu0 %vm804_vm0, %v803_v0 }
 0x385   :  { %v756_v22 = vpop.f32.mrb[4].mxu0 }
 0x386   :  { %v421_v23 = vadd.f32 %v756_v22, %v318_v20  ;;  %v412_v24 = vpop.f32.mrb[5].mxu0  ;;  %v628_v22 = vlaneseq }
 0x387   :  { %v413_v26 = vadd.f32 %v412_v24, %v308_v18  ;;  %v757_v27 = vpop.f32.mrb[6].mxu0 }
 0x388   :  { %v424_v28 = vadd.f32 %v757_v27, %v323_v21  ;;  %v415_v29 = vpop.f32.mrb[7].mxu0  ;;  %v445_v32 = vmax.f32 %v421_v23, 0.0  ;;  %v629_v23 = vshrl.u32 %v628_v22, 7 }
 0x389   :  { %v416_v31 = vadd.f32 %v415_v29, %v313_v19  ;;  %v443_v34 = vmax.f32 %v413_v26, 0.0 }
 0x38a   :  { %v446_v33 = vmax.f32 %v424_v28, 0.0  ;;  %v630_v24 = vsub.s32 0, %v629_v23 }
 0x38b   :  { %v444_v35 = vmax.f32 %v416_v31, 0.0 }
 0x38c   :  { %v460_v36 = vpack.c.bf16 %v446_v33, %v445_v32 }
 0x38d   :  { %v459_v38 = vpack.c.bf16 %v444_v35, %v443_v34  ;;  %v760_v39 = vpop.f32.mrb[8].mxu0 }
 0x38e   :  { %v437_v40 = vadd.f32 %v760_v39, %v338_v37  ;;  %v428_v41 = vpop.f32.mrb[9].mxu0 }
 0x38f   :  { %v429_v43 = vadd.f32 %v428_v41, %v328_v25  ;;  %v761_v44 = vpop.f32.mrb[10].mxu0  ;;  %762 = vmatprep.subr.bf16.mxu1 %v459_v38  ;;  %v626_v25 = vpop.permute.xlu1 %625 }
 0x390   :  { %v440_v45 = vadd.f32 %v761_v44, %v343_v42  ;;  %v431_v46 = vpop.f32.mrb[11].mxu0  ;;  %763 = vmatpush3.bf16.msra.mxu1 %v459_v38  ;;  %v449_v48 = vmax.f32 %v437_v40, 0.0  ;;  %v631_v26 = vrot.slane %v626_v25, %v630_v24 }
 0x391   :  { %v432_v47 = vadd.f32 %v431_v46, %v333_v30  ;;  %764 = vmatprep.subr.bf16.mxu1 %v460_v36  ;;  %v447_v50 = vmax.f32 %v429_v43, 0.0 }
 0x392   :  { %v450_v49 = vmax.f32 %v440_v45, 0.0 }
 0x393   :  { %v448_v51 = vmax.f32 %v432_v47, 0.0 }
 0x394   :  { %v462_v52 = vpack.c.bf16 %v450_v49, %v449_v48  ;;  %765 = vmatpush3.bf16.msra.mxu1 %v460_v36 }
 0x395   :  { %v461_v53 = vpack.c.bf16 %v448_v51, %v447_v50 }
 0x397   :  { %766 = vmatprep.subr.bf16.mxu1 %v461_v53 }
 0x398   :  { %767 = vmatpush3.bf16.msra.mxu1 %v461_v53 }
 0x399   :  { %768 = vmatprep.subr.bf16.mxu1 %v462_v52 }
 0x39c   :  { %769 = vmatpush3.bf16.msra.mxu1 %v462_v52 }
 0x39d   :  { %782 = vmatprep.subr.bf16.mxu1 %v803_v0 }
 0x39f   :  { %771 = vmatmul.mubr.msk.bf16.vlgmr.msra.gmra.mrb[8].mxu1 %vm493_vm7, %v801_v54 }
 0x3a0   :  { %784 = vmatprep.mubr.msk.bf16.mxu1 %vm804_vm0, %v803_v0 }
 0x472   :  { %v772_v58 = vpop.f32.mrb[8].mxu1 }
 0x473   :  { %v543_v59 = vadd.f32 %v772_v58, %v476_v57  ;;  %v534_v60 = vpop.f32.mrb[9].mxu1 }
 0x474   :  { %v535_v62 = vadd.f32 %v534_v60, %v466_v55  ;;  %v773_v63 = vpop.f32.mrb[10].mxu1 }
 0x475   :  { %v546_v1 = vadd.f32 %v773_v63, %v481_v61  ;;  %v537_v2 = vpop.f32.mrb[11].mxu1  ;;  %v551_v4 = vmax.f32 %v543_v59, 0.0 }
 0x476   :  { %v538_v3 = vadd.f32 %v537_v2, %v471_v56  ;;  %v549_v6 = vmax.f32 %v535_v62, 0.0 }
 0x477   :  { %v552_v5 = vmax.f32 %v546_v1, 0.0 }
 0x478   :  { %v550_v7 = vmax.f32 %v538_v3, 0.0 }
 0x479   :  { %v558_v8 = vpack.c.bf16 %v552_v5, %v551_v4 }
 0x47a   :  { %v557_v9 = vpack.c.bf16 %v550_v7, %v549_v6 }
 0x47c   :  { %775 = vmatpush3.bf16.msra.mxu0 %v557_v9 }
 0x47d   :  { %776 = vmatprep.subr.bf16.mxu0 %v803_v0  ;;  %v620_v0 = vld [vmem:[%s1045_s13] sm:$0x1] }
 0x480   :  { %777 = vmatpush3.bf16.msra.mxu0 %v558_v8 }
 0x483   :  { %779 = vmatmul.mubr.msk.bf16.vlgmr.msra.gmra.mrb[12].mxu0 %vm365_vm6, %v802_v10 }
 0x556   :  { %v611_v12 = vpop.f32.mrb[12].mxu0 }
 0x557   :  { %v612_v13 = vadd.f32 %v611_v12, %v562_v11  ;;  %v780_v14 = vpop.f32.mrb[13].mxu0 }
 0x558   :  { %v614_v16 = vpop.f32.mrb[14].mxu0 }
 0x559   :  { %v615_v17 = vadd.f32 %v614_v16, %v567_v15  ;;  %v781_v18 = vpop.f32.mrb[15].mxu0  ;;  %v618_v19 = vmax.f32 %v612_v13, 0.0 }
 0x55b   :  { %v619_v20 = vmax.f32 %v615_v17, 0.0 }
 0x55d   :  { %v622_v21 = vpack.c.bf16 %v619_v20, %v618_v19 }
 0x55f   :  { %783 = vmatpush3.bf16.msra.mxu1 %v622_v21 }
 0x562   :  { %785 = vmatmul.mubr.msk.bf16.vlgmr.msra.gmra.mrb[12].mxu1 %vm227_vm5, %v620_v0 }
 0x635   :  { %v669_v27 = vpop.f32.mrb[12].mxu1 }
 0x636   :  { %v670_v28 = vadd.f32 %v669_v27, %v631_v26  ;;  %v786_v29 = vpop.f32.mrb[13].mxu1 }
 0x637   :  { %v672_v30 = vpop.f32.mrb[14].mxu1 }
 0x638   :  { %675 = vst [vmem:[%s1046_s15] sm:$0x1] %v670_v28  ;;  %v787_v31 = vpop.f32.mrb[15].mxu1 }

</bundles_post_ra>
